<compile_context>
chip_gen: v7x
topology: tpu7x:2x2x1
jax: 0.10.0
libtpu: 0.0.40
codegen_flags: <defaults>
</compile_context>

<pallas_src>
import math

import jax
import jax.numpy as jnp
from jax.experimental import pallas as pl
from jax.experimental.pallas import tpu as pltpu

_LANES = 128
_MAX_FOLD_WIDTH = 2048  # cap on folded lane width (keeps vreg / DMA rows modest)


def _z_block_kernel(x_ref, d_ref, theta_ref, o_ref):
    # Elementwise hot path: relu(x - d - theta).
    # theta_ref is (1, W) and broadcasts over the sublane (row) dimension.
    o_ref[...] = jnp.maximum(
        x_ref[...] - d_ref[...] - theta_ref[...], 0.0
    ).astype(o_ref.dtype)


def _pick_target_block_bytes():
    """Per-buffer block-size target, scaled with the generation's HBM BW."""
    try:
        kind = jax.devices()[0].device_kind.lower()
    except Exception:  # pragma: no cover - defensive; keep a safe default
        return 2 << 20
    if ("v6" in kind) or ("v7" in kind) or ("7x" in kind):
        # v6e / v7x: 3 streams x 2 buffers x 4 MiB = 24 MiB < 32 MiB scoped default.
        return 4 << 20
    # v5e and unknown chips: 3 x 2 x 2 MiB = 12 MiB < 16 MiB scoped default.
    return 2 << 20


def z_block_forward(x, d, theta, *, target_block_bytes=None):
    """relu(x - d - theta) with theta (p,) broadcast along the last dim of x/d."""
    assert x.shape == d.shape, "x and d must have identical shapes"
    p = x.shape[-1]
    assert theta.shape == (p,), "theta must have shape (p,)"

    if target_block_bytes is None:
        target_block_bytes = _pick_target_block_bytes()

    orig_shape = x.shape
    dtype = x.dtype
    itemsize = jnp.dtype(dtype).itemsize
    # Sublane packing multiple: 8 for 32-bit, 16 for bf16, 32 for int8/fp8.
    sub = 8 * max(1, 4 // itemsize)

    theta = theta.astype(dtype)
    rows = math.prod(orig_shape[:-1])

    # ---- lane fold (gcd generalization): make the last dim a multiple of 128 ----
    if p % _LANES == 0:
        k = 1  # already lane-dense
    else:
        base = _LANES // math.gcd(p, _LANES)
        if base * p <= _MAX_FOLD_WIDTH and rows % base == 0:
            k = base  # free contiguous reshape (rows, p) -> (rows//k, k*p)
        else:
            # Copy-free fallback: keep the full last dim p (legal block even if
            # not a multiple of 128).  Masked stores, but no pad / slice copies.
            k = 1
    width = k * p
    r2 = rows // k

    # ---- row tile: ~target_block_bytes per stream, dtype-aware rounding ----
    bytes_per_row = width * itemsize
    max_tile = max(sub, (target_block_bytes // bytes_per_row) // sub * sub)
    if r2 <= max_tile:
        tile = r2  # single (possibly ragged) block; equal-to-full-dim is always legal
    else:
        tile = int(max_tile)
    grid = (pl.cdiv(r2, tile),)  # ragged last block handled by Pallas (OOB writes dropped)

    # Contiguous row-major reshapes are free (bitcast); no jnp.pad, no slice-back.
    x2 = x.reshape(r2, width)
    d2 = d.reshape(r2, width)
    theta2 = jnp.tile(theta, k).reshape(1, width)

    out2 = pl.pallas_call(
        _z_block_kernel,
        out_shape=jax.ShapeDtypeStruct((r2, width), dtype),
        grid_spec=pltpu.PrefetchScalarGridSpec(
            num_scalar_prefetch=0,
            grid=grid,
            in_specs=[
                pl.BlockSpec((tile, width), lambda i: (i, 0)),  # x tile
                pl.BlockSpec((tile, width), lambda i: (i, 0)),  # d tile
                pl.BlockSpec((1, width), lambda i: (0, 0)),     # theta row (resident)
            ],
            out_specs=pl.BlockSpec((tile, width), lambda i: (i, 0)),
        ),
        compiler_params=pltpu.CompilerParams(
            # Single row-tile axis; sharded across the 2 TensorCores on v7x,
            # harmless on single-TC v5e / v6e.
            dimension_semantics=("parallel",),
        ),
    )(x2, d2, theta2)

    return out2.reshape(orig_shape)


if __name__ == "__main__":
    # Module config: p = feature dim, theta_init deterministic scalar init.
    p = 32
    theta_init = 0.1
    theta = theta_init * jnp.ones((p,), dtype=jnp.float32)  # nn.Parameter equivalent

    key = jax.random.PRNGKey(0)

    def ref_fn(x, d, th):
        return jnp.maximum(x - d - th, 0.0)

    # Case 1: small folded lane-dense path (rows % (128//gcd(p,128)) == 0), grid = 1.
    k1, k2, key = jax.random.split(key, 3)
    x1 = jax.random.normal(k1, (2, 8, p), dtype=jnp.float32)
    d1 = jax.random.normal(k2, (2, 8, p), dtype=jnp.float32)
    o1 = jax.block_until_ready(z_block_forward(x1, d1, theta))
    assert o1.shape == x1.shape
    assert jnp.allclose(o1, ref_fn(x1, d1, theta), atol=1e-6), "mismatch (fold path)"

    # Case 2: ragged row count -> copy-free k=1 fallback (no pad, no slice-back).
    k1, k2, key = jax.random.split(key, 3)
    x2 = jax.random.normal(k1, (3, 7, p), dtype=jnp.float32)
    d2 = jax.random.normal(k2, (3, 7, p), dtype=jnp.float32)
    o2 = jax.block_until_ready(z_block_forward(x2, d2, theta))
    assert jnp.allclose(o2, ref_fn(x2, d2, theta), atol=1e-6), "mismatch (k=1 fallback)"

    # Case 3: multi-step grid with a ragged last block (small tile forced).
    k1, k2, key = jax.random.split(key, 3)
    x3 = jax.random.normal(k1, (150, 8, p), dtype=jnp.float32)
    d3 = jax.random.normal(k2, (150, 8, p), dtype=jnp.float32)
    o3 = jax.block_until_ready(
        z_block_forward(x3, d3, theta, target_block_bytes=64 * 1024)
    )
    assert jnp.allclose(o3, ref_fn(x3, d3, theta), atol=1e-6), "mismatch (ragged grid)"

    # Case 4: p that does not divide 128 -> gcd fold (p=48, k=8, width=384).
    p4 = 48
    theta4 = theta_init * jnp.ones((p4,), dtype=jnp.float32)
    k1, k2, key = jax.random.split(key, 3)
    x4 = jax.random.normal(k1, (2, 16, p4), dtype=jnp.float32)
    d4 = jax.random.normal(k2, (2, 16, p4), dtype=jnp.float32)
    o4 = jax.block_until_ready(z_block_forward(x4, d4, theta4))
    assert jnp.allclose(o4, ref_fn(x4, d4, theta4), atol=1e-6), "mismatch (gcd fold)"

    print("KERNEL_OK")
</pallas_src>

<mosaic_0001>
module attributes {stable_mosaic.version = 11 : i64} {
  func.func @_z_block_kernel(%arg0: i32, %arg1: memref<4x128xf32, #tpu.memory_space<vmem>>, %arg2: memref<4x128xf32, #tpu.memory_space<vmem>>, %arg3: memref<1x128xf32, #tpu.memory_space<vmem>>, %arg4: memref<4x128xf32, #tpu.memory_space<vmem>>) attributes {dimension_semantics = [#tpu.dimension_semantics<parallel>], iteration_bounds = array<i64: 1>, scalar_prefetch = 0 : i64, scratch_operands = 0 : i64, tpu.core_type = #tpu.core_type<tc>, window_params = [{transform_indices = @transform_0, window_bounds = array<i64: 4, 128>}, {transform_indices = @transform_1, window_bounds = array<i64: 4, 128>}, {pipeline_mode = #tpu.pipeline_mode<synchronous>, transform_indices = @transform_2, window_bounds = array<i64: 1, 128>}, {transform_indices = @transform_3, window_bounds = array<i64: 4, 128>}]} {
    %c0 = arith.constant 0 : index
    %c0_0 = arith.constant 0 : index
    %0 = vector.load %arg1[%c0, %c0_0] : memref<4x128xf32, #tpu.memory_space<vmem>>, vector<4x128xf32>
    %c0_1 = arith.constant 0 : index
    %c0_2 = arith.constant 0 : index
    %1 = vector.load %arg2[%c0_1, %c0_2] : memref<4x128xf32, #tpu.memory_space<vmem>>, vector<4x128xf32>
    %2 = arith.subf %0, %1 : vector<4x128xf32>
    %c0_3 = arith.constant 0 : index
    %c0_4 = arith.constant 0 : index
    %3 = vector.load %arg3[%c0_3, %c0_4] : memref<1x128xf32, #tpu.memory_space<vmem>>, vector<1x128xf32>
    %4 = vector.broadcast %3 : vector<1x128xf32> to vector<4x128xf32>
    %5 = arith.subf %2, %4 : vector<4x128xf32>
    %cst = arith.constant 0.000000e+00 : f32
    %6 = vector.broadcast %cst : f32 to vector<4x128xf32>
    %7 = arith.maximumf %5, %6 : vector<4x128xf32>
    %c0_5 = arith.constant 0 : index
    %c0_6 = arith.constant 0 : index
    %8 = vector.load %arg4[%c0_5, %c0_6] : memref<4x128xf32, #tpu.memory_space<vmem>>, vector<4x128xf32>
    tpu.vector_store %arg4[%c0_5, %c0_6], %7 {strides = array<i32>} : memref<4x128xf32, #tpu.memory_space<vmem>>, vector<4x128xf32>,
    return
  }
  func.func @transform_0(%arg0: i32) -> (i32, i32) {
    %c0_i32 = arith.constant 0 : i32
    %c0_i32_0 = arith.constant 0 : i32
    return %arg0, %c0_i32 : i32, i32
  }
  func.func @transform_1(%arg0: i32) -> (i32, i32) {
    %c0_i32 = arith.constant 0 : i32
    %c0_i32_0 = arith.constant 0 : i32
    return %arg0, %c0_i32 : i32, i32
  }
  func.func @transform_2(%arg0: i32) -> (i32, i32) {
    %c0_i32 = arith.constant 0 : i32
    %c0_i32_0 = arith.constant 0 : i32
    %c0_i32_1 = arith.constant 0 : i32
    return %c0_i32, %c0_i32_0 : i32, i32
  }
  func.func @transform_3(%arg0: i32) -> (i32, i32) {
    %c0_i32 = arith.constant 0 : i32
    %c0_i32_0 = arith.constant 0 : i32
    return %arg0, %c0_i32 : i32, i32
  }
}

</mosaic_0001>

<bundles_post_ra>
// kernel: tpu_custom_call.1
= control target key start
LH: loop header
LB: loop body
LE: loop exit
PB: predicated region body
PF: predicated region fallthrough
CT: control target
= control target key end

     0   :  { %8 = vsyncpa [#allocation3], 0  ;;  %s206_s0 = inlined_call_operand.hbm [shape: f32[4,128], index: 0, kind: input, shape index: {}]   ;;  %s207_s1 = inlined_call_operand.hbm [shape: f32[4,128], index: 1, kind: input, shape index: {}]   ;;  %s208_s2 = inlined_call_operand.vmem [shape: f32[1,128], index: 2, kind: input, shape index: {}]   ;;  %s209_s3 = inlined_call_operand.hbm [shape: f32[4,128], index: 3, kind: output, shape index: {}]  }
   0x1   :  { %9 = vsyncpa [#allocation6], 0 }
   0x2   :  { %10 = vsyncpa [#allocation4], 0  ;;  %s144_s12 = smov [#allocation2]   ;;  %s145_s14 = smov [#allocation5]  }
   0x3   :  { %s17_s13 = sshll.u32 %s144_s12, 4  ;;  %s27_s15 = sshll.u32 %s145_s14, 4  ;;  %s18_s13 = int_to_ptr.vmem [resolvable:$true] %s17_s13  ;;  %s28_s15 = int_to_ptr.vmem [resolvable:$true] %s27_s15 }
   0x4   :  { %s72_s18 = scalar_lea.hbm %s206_s0, 64 }
   0x5   :  { %p73_p0 = scmp.ne.s32.totalorder %s206_s0, %s72_s18  ;;  %p76_p1 = scmp.lt.u32.totalorder %s72_s18, %s206_s0 }
   0x7   :  { %p78_p2 = pnand %p76_p1, %p73_p0 }
   0x9   :  { %81 = shalt.err (!%p78_p2)
}
   0xa   :  { %s82_s23 = scalar_lea.vmem %s18_s13, 64  ;;  %p87_p4 = scmp.lt.s32.totalorder %s18_s13, %s18_s13 }
   0xb   :  { %p83_p3 = scmp.ne.s32.totalorder %s18_s13, %s82_s23  ;;  %p88_p5 = scmp.lt.s32.totalorder %s82_s23, %s82_s23 }
   0xd   :  { %p89_p6 = por %p88_p5, %p87_p4 }
   0xf   :  { %p90_p7 = pnand %p89_p6, %p83_p3 }
  0x11   :  { %93 = shalt.err (!%p90_p7)
}
  0x12   :  { %20 = dma.hbm_to_vmem [thread:$0]  %s206_s0, 64, %s18_s13, [#allocation3]  }
  0x13   :  { %s94_s28 = scalar_lea.hbm %s207_s1, 64 }
  0x14   :  { %p95_p8 = scmp.ne.s32.totalorder %s207_s1, %s94_s28  ;;  %p98_p9 = scmp.lt.u32.totalorder %s94_s28, %s207_s1 }
  0x16   :  { %p100_p10 = pnand %p98_p9, %p95_p8 }
  0x18   :  { %103 = shalt.err (!%p100_p10)
}
  0x19   :  { %s104_s6 = scalar_lea.vmem %s28_s15, 64  ;;  %p109_p12 = scmp.lt.s32.totalorder %s28_s15, %s28_s15 }
  0x1a   :  { %p105_p11 = scmp.ne.s32.totalorder %s28_s15, %s104_s6  ;;  %p110_p13 = scmp.lt.s32.totalorder %s104_s6, %s104_s6 }
  0x1c   :  { %p111_p0 = por %p110_p13, %p109_p12 }
  0x1e   :  { %p112_p1 = pnand %p111_p0, %p105_p11 }
  0x20   :  { %115 = shalt.err (!%p112_p1)
}
  0x21   :  { %30 = dma.hbm_to_vmem [thread:$0]  %s207_s1, 64, %s28_s15, [#allocation6]  }
  0x22   :  { %138 = dma.done.wait [#allocation3], 64  }
  0x23   :  { %139 = vsyncadd [#allocation3], 4294967232 }
  0x24   :  { %140 = dma.done.wait [#allocation6], 64  }
  0x25   :  { %141 = vsyncadd [#allocation6], 4294967232  ;;  %v39_v0 = vld [vmem:[#allocation2] sm:$0xf]  ;;  %v40_v1 = vld [vmem:[#allocation5] sm:$0xf] }
  0x26   :  { %v68_v2 = vld [vmem:[%s208_s2] ss:$0 sm:$0xff]  ;;  %v41_v3 = vsub.f32 %v39_v0, %v40_v1  ;;  %s146_s10 = smov [#allocation7]  }
  0x27   :  { %s58_s11 = sshll.u32 %s146_s10, 4  ;;  %s59_s11 = int_to_ptr.vmem [resolvable:$true] %s58_s11 }
  0x28   :  { %v49_v4 = vsub.f32 %v41_v3, %v68_v2  ;;  %s116_s12 = scalar_lea.vmem %s59_s11, 64  ;;  %p121_p3 = scmp.lt.s32.totalorder %s59_s11, %s59_s11 }
  0x29   :  { %p117_p2 = scmp.ne.s32.totalorder %s59_s11, %s116_s12  ;;  %p122_p4 = scmp.lt.s32.totalorder %s116_s12, %s116_s12 }
  0x2a   :  { %v50_v5 = vmax.f32 %v49_v4, 0.0 }
  0x2b   :  { %p123_p5 = por %p122_p4, %p121_p3 }
  0x2c   :  { %51 = vst [vmem:[#allocation7] sm:$0xf] %v50_v5 }
  0x2d   :  { %p124_p6 = pnand %p123_p5, %p117_p2 }
  0x2f   :  { %127 = shalt.err (!%p124_p6)
}
  0x30   :  { %s128_s14 = scalar_lea.hbm %s209_s3, 64 }
  0x31   :  { %p129_p7 = scmp.ne.s32.totalorder %s209_s3, %s128_s14  ;;  %p132_p8 = scmp.lt.u32.totalorder %s128_s14, %s209_s3 }
  0x33   :  { %p134_p9 = pnand %p132_p8, %p129_p7 }
  0x35   :  { %137 = shalt.err (!%p134_p9)
}
  0x36   :  { %61 = dma.vmem_to_hbm [thread:$0]  %s59_s11, 64, %s209_s3, [#allocation4]  }
  0x37   :  { %142 = dma.done.wait [#allocation4], 64  }
  0x38   :  { %143 = vsyncadd [#allocation4], 4294967232 }
  0x39   :  { %65 = vsyncpa [#allocation3], 1 }
  0x3a   :  { %66 = vsyncpa [#allocation6], 1 }
  0x3b   :  { %67 = vsyncpa [#allocation4], 1 }

</bundles_post_ra>
